<compile_context>
chip_gen: v7x
topology: tpu7x:2x2x1
jax: 0.10.0
libtpu: 0.0.40
codegen_flags: <defaults>
</compile_context>

<pallas_src>
import functools

import jax
import jax.numpy as jnp
from jax.experimental import pallas as pl
from jax.experimental.pallas import tpu as pltpu


def _label_smoothing_kernel(target_ref, out_ref, *, smoothing, classes):
    # target_ref: (TB, 1) int32 tile of the target indices (same block for all
    #             class tiles of a given row block).
    # out_ref:    (TB, TC) output tile.
    TB, TC = out_ref.shape
    col0 = pl.program_id(1) * TC                       # class-tile origin
    # Shift the (TB, 1) target instead of adding col0 to the (TB, TC) iota.
    tgt_local = target_ref[...] - col0                 # (TB, 1) int32
    col = jax.lax.broadcasted_iota(jnp.int32, (TB, TC), 1)
    off_val = jnp.asarray(smoothing / (classes - 1), dtype=out_ref.dtype)
    conf = jnp.asarray(1.0 - smoothing, dtype=out_ref.dtype)
    # Select directly in the output dtype; Pallas masks edge-block stores.
    out_ref[...] = jnp.where(col == tgt_local, conf, off_val)


def label_smoothing_loss(pred, target, *, classes, smoothing=0.0,
                         block_rows=None, block_cols=None,
                         block_bytes=8 << 20):
    """Returns the smoothed one-hot distribution (the PyTorch forward's output).

    pred is only consulted for shape/dtype: the log_softmax in the reference
    forward is discarded, so reading pred would be pure wasted HBM bandwidth.
    """
    B, C = pred.shape
    assert C == classes, f"pred has {C} classes, module configured for {classes}"
    assert classes > 1, "smoothing/(classes-1) requires classes >= 2"
    dtype = pred.dtype
    itemsize = jnp.dtype(dtype).itemsize

    # ---- Tile selection: grow the contiguous class dim first. ----
    # TC is the full class dim (always legal) or a multiple of 128 (lane-dense,
    # unmasked vst on interior blocks); TB is the full batch dim or a multiple
    # of 8 sublanes. Blocks need not divide (B, C): edge stores are masked.
    if block_cols is None:
        block_cols = 8192
    TC = C if C <= block_cols else block_cols

    if block_rows is None:
        rows_fit = max(8, (block_bytes // (TC * itemsize)) // 8 * 8)
    else:
        rows_fit = block_rows
    TB = B if B <= rows_fit else rows_fit

    # v7x megacore: if everything fits one tile, split rows so both cores work.
    if TB >= B and TC >= C and B >= 16:
        half = ((B + 1) // 2 + 7) // 8 * 8
        if half < B:
            TB = half

    grid = (pl.cdiv(B, TB), pl.cdiv(C, TC))   # class tiles innermost

    tgt2d = target.astype(jnp.int32).reshape(B, 1)

    kernel = functools.partial(
        _label_smoothing_kernel, smoothing=float(smoothing), classes=int(classes)
    )

    # Explicit VMEM budget: 2 double-buffered output tiles + target + margin.
    vmem_limit = max(2 * TB * TC * itemsize + 2 * TB * 4 + (4 << 20), 16 << 20)

    return pl.pallas_call(
        kernel,
        out_shape=jax.ShapeDtypeStruct((B, C), dtype),
        grid=grid,
        in_specs=[pl.BlockSpec((TB, 1), lambda i, j: (i, 0))],
        out_specs=pl.BlockSpec((TB, TC), lambda i, j: (i, j)),
        compiler_params=pltpu.CompilerParams(
            dimension_semantics=("parallel", "parallel"),
            vmem_limit_bytes=int(vmem_limit)),
        cost_estimate=pl.CostEstimate(
            flops=0,
            transcendentals=0,
            bytes_accessed=B * C * itemsize + B * 4),
    )(tgt2d)


def _reference(pred, target, classes, smoothing):
    B, C = pred.shape
    off_val = smoothing / (classes - 1)
    ref = jnp.full((B, C), off_val, dtype=pred.dtype)
    return ref.at[jnp.arange(B), target].set(1.0 - smoothing)


if __name__ == "__main__":
    key = jax.random.PRNGKey(0)
    k1, k2, k3, k4 = jax.random.split(key, 4)
    smoothing = 0.1

    # Case 1: small shapes matching the original test harness (single tile).
    B, C = 8, 16
    pred = jax.random.normal(k1, (B, C), dtype=jnp.float32)
    target = jax.random.randint(k2, (B,), 0, C, dtype=jnp.int32)
    out = jax.block_until_ready(
        label_smoothing_loss(pred, target, classes=C, smoothing=smoothing))
    assert out.shape == (B, C) and out.dtype == pred.dtype
    assert jnp.allclose(out, _reference(pred, target, C, smoothing), atol=1e-6)

    # Case 2: exercises the grid, non-dividing edge blocks (masked stores),
    # the shifted-target path, and megacore row-splitting with small tiles.
    B2, C2 = 24, 300
    pred2 = jax.random.normal(k3, (B2, C2), dtype=jnp.float32)
    target2 = jax.random.randint(k4, (B2,), 0, C2, dtype=jnp.int32)
    out2 = jax.block_until_ready(
        label_smoothing_loss(pred2, target2, classes=C2, smoothing=smoothing,
                             block_rows=16, block_cols=128))
    assert out2.shape == (B2, C2)
    assert jnp.allclose(out2, _reference(pred2, target2, C2, smoothing), atol=1e-6)

    print("KERNEL_OK")
</pallas_src>

<mosaic_0001>
module attributes {stable_mosaic.version = 11 : i64} {
  func.func @_label_smoothing_kernel(%arg0: i32, %arg1: i32, %arg2: memref<8x1xi32, #tpu.memory_space<vmem>>, %arg3: memref<8x16xf32, #tpu.memory_space<vmem>>) attributes {dimension_semantics = [#tpu.dimension_semantics<parallel>, #tpu.dimension_semantics<parallel>], iteration_bounds = array<i64: 1, 1>, scalar_prefetch = 0 : i64, scratch_operands = 0 : i64, tpu.core_type = #tpu.core_type<tc>, window_params = [{transform_indices = @transform_0, window_bounds = array<i64: 8, 1>}, {transform_indices = @transform_1, window_bounds = array<i64: 8, 16>}]} {
    %c16_i32 = arith.constant 16 : i32
    %0 = arith.muli %arg1, %c16_i32 : i32
    %c0 = arith.constant 0 : index
    %c0_0 = arith.constant 0 : index
    %1 = vector.load %arg2[%c0, %c0_0] : memref<8x1xi32, #tpu.memory_space<vmem>>, vector<8x1xi32>
    %2 = vector.broadcast %0 : i32 to vector<8x1xi32>
    %3 = arith.subi %1, %2 : vector<8x1xi32>
    %4 = tpu.iota {dimensions = array<i32: 1>} : vector<8x16xi32>
    %5 = vector.broadcast %3 : vector<8x1xi32> to vector<8x16xi32>
    %6 = arith.cmpi eq, %4, %5 : vector<8x16xi32>
    %cst = arith.constant 0.899999976 : f32
    %cst_1 = arith.constant 0.00666666683 : f32
    %7 = vector.broadcast %cst : f32 to vector<8x16xf32>
    %8 = vector.broadcast %cst_1 : f32 to vector<8x16xf32>
    %9 = arith.select %6, %7, %8 : vector<8x16xi1>, vector<8x16xf32>
    %c0_2 = arith.constant 0 : index
    %c0_3 = arith.constant 0 : index
    %10 = vector.load %arg3[%c0_2, %c0_3] : memref<8x16xf32, #tpu.memory_space<vmem>>, vector<8x16xf32>
    tpu.vector_store %arg3[%c0_2, %c0_3], %9 {strides = array<i32>} : memref<8x16xf32, #tpu.memory_space<vmem>>, vector<8x16xf32>,
    return
  }
  func.func @transform_0(%arg0: i32, %arg1: i32) -> (i32, i32) {
    %c0_i32 = arith.constant 0 : i32
    %c0_i32_0 = arith.constant 0 : i32
    return %arg0, %c0_i32 : i32, i32
  }
  func.func @transform_1(%arg0: i32, %arg1: i32) -> (i32, i32) {
    %c0_i32 = arith.constant 0 : i32
    return %arg0, %arg1 : i32, i32
  }
}

</mosaic_0001>

<bundles_post_ra>
// kernel: tpu_custom_call.1
= control target key start
LH: loop header
LB: loop body
LE: loop exit
PB: predicated region body
PF: predicated region fallthrough
CT: control target
= control target key end

     0   :  { %s92_s0 = inlined_call_operand.vmem [shape: s32[8,1], index: 0, kind: input, shape index: {}]   ;;  %s93_s1 = inlined_call_operand.hbm [shape: f32[8,16], index: 1, kind: output, shape index: {}]  }
   0x1   :  { %v10_v0 = vld [vmem:[%s92_s0] sm:$0xff] }
   0x2   :  { %6 = vsyncpa [#allocation3], 0  ;;  %v64_v1 = vmov 0   ;;  %v13_v2 = vlaneseq  ;;  %s65_s8 = smov [#allocation2]   ;;  %vm20_vm0 = vcmask 130048  }
   0x3   :  { %39 = vset.pattern.permute.xlu0 %v64_v1  ;;  %s28_s9 = sshll.u32 %s65_s8, 4  ;;  %v66_v5 = vmov 0.006666667   ;;  %s29_s9 = int_to_ptr.vmem [resolvable:$true] %s28_s9 }
   0x4   :  { %16 = vperm.xlu0 %39, %v10_v0   ;;  %v14_v3 = vand.u32 127, %v13_v2  ;;  %s40_s10 = scalar_lea.vmem %s29_s9, 128  ;;  %p45_p1 = scmp.lt.s32.totalorder %s29_s9, %s29_s9 }
   0x5   :  { %p41_p0 = scmp.ne.s32.totalorder %s29_s9, %s40_s10  ;;  %p46_p2 = scmp.lt.s32.totalorder %s40_s10, %s40_s10 }
   0x7   :  { %p47_p3 = por %p46_p2, %p45_p1 }
   0x9   :  { %p48_p4 = pnand %p47_p3, %p41_p0 }
  0x83   :  { %v17_v4 = vpop.permute.xlu0 %16 }
  0x84   :  { %vm18_vm1 = vcmp.eq.s32.totalorder %v14_v3, %v17_v4 }
  0x85   :  { %v19_v6 = vsel %vm18_vm1, 0.9, %v66_v5 }
  0x86   :  { %21 = vst.msk [vmem:[#allocation2] sm:$0xff] %vm20_vm0, %v19_v6 }
  0x87   :  { %51 = shalt.err (!%p48_p4)
}
  0x88   :  { %s52_s12 = scalar_lea.hbm %s93_s1, 128 }
  0x89   :  { %p53_p5 = scmp.ne.s32.totalorder %s93_s1, %s52_s12  ;;  %p56_p6 = scmp.lt.u32.totalorder %s52_s12, %s93_s1 }
  0x8b   :  { %p58_p7 = pnand %p56_p6, %p53_p5 }
  0x8d   :  { %61 = shalt.err (!%p58_p7)
}
  0x8e   :  { %31 = dma.vmem_to_hbm [thread:$0]  %s29_s9, 128, %s93_s1, [#allocation3]  }
  0x8f   :  { %62 = dma.done.wait [#allocation3], 128  }
  0x90   :  { %63 = vsyncadd [#allocation3], 4294967168 }
  0x91   :  { %35 = vsyncpa [#allocation3], 1 }

</bundles_post_ra>
